<compile_context>
chip_gen: v7x
topology: tpu7x:2x2x1
jax: 0.10.0
libtpu: 0.0.40
codegen_flags: <defaults>
</compile_context>

<pallas_src>
import functools

import jax
import jax.numpy as jnp
from jax.experimental import pallas as pl
from jax.experimental.pallas import tpu as pltpu


def dual_attention_kernel(f1_ref, f2_ref, wab_ref, b1_ref, w2_ref, b2_ref,
                          out_ref, alpha_ref):
    bb = f1_ref.shape[0]           # images in this block (static)
    a_dim = b1_ref.shape[0]        # attention_dim

    w_ab = wab_ref[...]            # (2A, C) compute dtype, [W1a; W1b]
    w1a = w_ab[:a_dim]             # (A, C)  static sublane slice (A % 8 == 0)
    b1 = b1_ref[...]               # (A, 1) f32 column bias
    w2 = w2_ref[...]               # (A, 1) f32 conv2 weight column
    b2 = b2_ref[0]                 # f32 scalar (SMEM)

    # bb is small and static -> unrolled loop over the images in this block.
    for b in range(bb):
        f1 = f1_ref[b]             # (C, HW)
        f2 = f2_ref[b]
        diff = f2 - f1

        # conv1: 2 MXU matmuls instead of 4 (diff term computed once, and the
        # two diff products fused via the row-stacked [W1a; W1b] weight).
        m1 = jnp.dot(w1a, f1, preferred_element_type=jnp.float32)      # (A, HW)
        md = jnp.dot(w_ab, diff, preferred_element_type=jnp.float32)   # (2A, HW)
        pre1 = m1 + md[a_dim:] + b1            # W1a@f1 + W1b@diff + b1
        pre2 = pre1 + md[:a_dim]               # == W1a@f2 + W1b@diff + b1
        h1 = jnp.maximum(pre1, 0.0)            # ReLU
        h2 = jnp.maximum(pre2, 0.0)

        # conv2 (out_channels == 1) + sigmoid: VPU multiply + sublane reduce,
        # keeping the degenerate N=1 product off the MXU.  Lane-dense (1, HW).
        a1 = jax.nn.sigmoid(jnp.sum(h1 * w2, axis=0, keepdims=True) + b2)
        a2 = jax.nn.sigmoid(jnp.sum(h2 * w2, axis=0, keepdims=True) + b2)
        alpha_ref[b] = jnp.concatenate([a1, a2], axis=0)        # (2, HW)

        # alpha.repeat(1, feature_dim, 1, 1) == broadcast over C; then sum over
        # all spatial positions (lane reduce) -> one (C,) row per branch.
        o1 = jnp.sum(f1 * a1, axis=-1)         # (C,) f32
        o2 = jnp.sum(f2 * a2, axis=-1)
        out_ref[b] = jnp.stack([o1, o2], axis=0)                # (2, C)


def _pick_block_batch(batch, per_image_bytes, weight_bytes,
                      budget_bytes=20 * 1024 * 1024):
    """Largest divisor of `batch` whose double-buffered block fits the VMEM
    budget, while keeping >= 2 grid steps (v7x has 2 TensorCores)."""
    usable = max(budget_bytes // 2 - weight_bytes, per_image_bytes)
    cap = max(1, int(usable // per_image_bytes))
    cap = min(cap, batch)
    if batch >= 2:
        cap = min(cap, max(1, batch // 2))
    bb = 1
    for d in range(1, cap + 1):
        if batch % d == 0:
            bb = d
    return bb


def dual_attention(img_feat1, img_feat2, conv1_w, conv1_b, conv2_w, conv2_b,
                   *, compute_dtype=jnp.bfloat16):
    """DualAttention forward.

    img_feat*: (B, C, H, W) f32 (NCHW).  conv1_w: (A, 2C, 1, 1), conv1_b: (A,),
    conv2_w: (1, A, 1, 1), conv2_b: (1,).
    Returns (out1 (B, C), out2 (B, C), alpha1 (B, 1, H, W), alpha2 (B, 1, H, W)).
    """
    B, C, H, W = img_feat1.shape
    HW = H * W
    A = conv1_w.shape[0]

    # NCHW -> (B, C, HW): pure reshape, no transpose / extra HBM pass.
    f1 = img_feat1.reshape(B, C, HW).astype(compute_dtype)
    f2 = img_feat2.reshape(B, C, HW).astype(compute_dtype)

    # 1x1-conv weights -> matmul weights.  Row-stack [W1a; W1b] so that both
    # diff products fuse into a single (2A, C) @ (C, HW) MXU matmul.
    w1 = conv1_w.reshape(A, 2 * C)
    w_ab = jnp.concatenate([w1[:, :C], w1[:, C:]], axis=0).astype(compute_dtype)
    b1 = conv1_b.reshape(A, 1).astype(jnp.float32)
    w2 = conv2_w.reshape(A, 1).astype(jnp.float32)
    b2 = conv2_b.reshape(1).astype(jnp.float32)

    itemsize = jnp.dtype(compute_dtype).itemsize
    per_image = 2 * C * HW * itemsize + (2 * C + 2 * HW) * 4   # f1+f2 in, out+alpha out
    weight_bytes = 2 * A * C * itemsize + 4 * A * 4
    bb = _pick_block_batch(B, per_image, weight_bytes)
    grid = (B // bb,)

    out_shape = (
        jax.ShapeDtypeStruct((B, 2, C), jnp.float32),    # [attended f1; attended f2]
        jax.ShapeDtypeStruct((B, 2, HW), jnp.float32),   # [alpha1; alpha2], lane-dense
    )
    grid_spec = pltpu.PrefetchScalarGridSpec(
        num_scalar_prefetch=0,
        grid=grid,
        in_specs=[
            pl.BlockSpec((bb, C, HW), lambda i: (i, 0, 0)),      # f1
            pl.BlockSpec((bb, C, HW), lambda i: (i, 0, 0)),      # f2
            pl.BlockSpec((2 * A, C), lambda i: (0, 0)),          # [W1a; W1b]
            pl.BlockSpec((A, 1), lambda i: (0, 0)),              # b1 column
            pl.BlockSpec((A, 1), lambda i: (0, 0)),              # w2 column
            pl.BlockSpec(memory_space=pltpu.MemorySpace.SMEM),   # b2 scalar
        ],
        out_specs=[
            pl.BlockSpec((bb, 2, C), lambda i: (i, 0, 0)),
            pl.BlockSpec((bb, 2, HW), lambda i: (i, 0, 0)),
        ],
    )
    out, alpha = pl.pallas_call(
        dual_attention_kernel,
        out_shape=out_shape,
        grid_spec=grid_spec,
        compiler_params=pltpu.CompilerParams(
            dimension_semantics=("parallel",),
            # Explicit scoped-VMEM budget: block sizing targets <= ~20 MiB,
            # safely inside v7x's 64 MiB physical VMEM and above v5e's 16 MiB
            # default scoped limit.
            vmem_limit_bytes=40 * 1024 * 1024,
        ),
    )(f1, f2, w_ab, b1, w2, b2)

    out1 = out[:, 0, :]
    out2 = out[:, 1, :]
    alpha1 = alpha[:, 0, :].reshape(B, 1, H, W)   # pure reshape, no transpose
    alpha2 = alpha[:, 1, :].reshape(B, 1, H, W)
    return out1, out2, alpha1, alpha2


if __name__ == "__main__":
    # Small, TPU-friendly shapes: feature_dim=128, attention_dim=64, 8x8 spatial.
    B, C, H, W = 2, 128, 8, 8
    A = 64

    key = jax.random.PRNGKey(0)
    k1, k2, k3, k4, k5, k6 = jax.random.split(key, 6)
    img_feat1 = jax.random.normal(k1, (B, C, H, W), jnp.float32)
    img_feat2 = jax.random.normal(k2, (B, C, H, W), jnp.float32)
    conv1_w = jax.random.normal(k3, (A, 2 * C, 1, 1), jnp.float32) * 0.05
    conv1_b = jax.random.normal(k4, (A,), jnp.float32) * 0.05
    conv2_w = jax.random.normal(k5, (1, A, 1, 1), jnp.float32) * 0.05
    conv2_b = jax.random.normal(k6, (1,), jnp.float32) * 0.05

    # Pure-JAX reference (same math as the PyTorch module, NCHW, f32).
    def ref(f1, f2):
        diff = f2 - f1
        c1 = jnp.concatenate([f1, diff], axis=1)
        c2 = jnp.concatenate([f2, diff], axis=1)
        w1 = conv1_w[:, :, 0, 0]
        w2 = conv2_w[:, :, 0, 0]
        h1 = jax.nn.relu(jnp.einsum('bchw,ac->bahw', c1, w1)
                         + conv1_b[None, :, None, None])
        h2 = jax.nn.relu(jnp.einsum('bchw,ac->bahw', c2, w1)
                         + conv1_b[None, :, None, None])
        al1 = jax.nn.sigmoid(jnp.einsum('bahw,oa->bohw', h1, w2)
                             + conv2_b[None, :, None, None])
        al2 = jax.nn.sigmoid(jnp.einsum('bahw,oa->bohw', h2, w2)
                             + conv2_b[None, :, None, None])
        o1 = (f1 * al1).sum(-2).sum(-1).reshape(B, -1)
        o2 = (f2 * al2).sum(-2).sum(-1).reshape(B, -1)
        return o1, o2, al1, al2

    r1, r2, ra1, ra2 = ref(img_feat1, img_feat2)

    # f32 compute path: tight check against the reference.
    run_f32 = jax.jit(functools.partial(dual_attention, compute_dtype=jnp.float32))
    o1, o2, a1, a2 = run_f32(img_feat1, img_feat2, conv1_w, conv1_b,
                             conv2_w, conv2_b)
    jax.block_until_ready((o1, o2, a1, a2))
    assert o1.shape == (B, C) and a1.shape == (B, 1, H, W)
    assert jnp.allclose(o1, r1, atol=1e-3, rtol=1e-3)
    assert jnp.allclose(o2, r2, atol=1e-3, rtol=1e-3)
    assert jnp.allclose(a1, ra1, atol=1e-4, rtol=1e-4)
    assert jnp.allclose(a2, ra2, atol=1e-4, rtol=1e-4)

    # Default bf16 compute path (halves HBM traffic, ~2x MXU throughput):
    # tolerances consistent with bf16 rounding of the inputs/weights.
    run_bf16 = jax.jit(dual_attention)
    o1b, o2b, a1b, a2b = run_bf16(img_feat1, img_feat2, conv1_w, conv1_b,
                                  conv2_w, conv2_b)
    jax.block_until_ready((o1b, o2b, a1b, a2b))
    assert jnp.allclose(o1b, r1, atol=0.15, rtol=0.05)
    assert jnp.allclose(o2b, r2, atol=0.15, rtol=0.05)
    assert jnp.allclose(a1b, ra1, atol=0.015)
    assert jnp.allclose(a2b, ra2, atol=0.015)

    print("KERNEL_OK")
</pallas_src>

<mosaic_0001>
module attributes {stable_mosaic.version = 11 : i64} {
  func.func @dual_attention_kernel(%arg0: i32, %arg1: memref<1x128x64xf32, #tpu.memory_space<vmem>>, %arg2: memref<1x128x64xf32, #tpu.memory_space<vmem>>, %arg3: memref<128x128xf32, #tpu.memory_space<vmem>>, %arg4: memref<64x1xf32, #tpu.memory_space<vmem>>, %arg5: memref<64x1xf32, #tpu.memory_space<vmem>>, %arg6: memref<1xf32, #tpu.memory_space<smem>>, %arg7: memref<1x2x128xf32, #tpu.memory_space<vmem>>, %arg8: memref<1x2x64xf32, #tpu.memory_space<vmem>>) attributes {dimension_semantics = [#tpu.dimension_semantics<parallel>], iteration_bounds = array<i64: 2>, scalar_prefetch = 0 : i64, scratch_operands = 0 : i64, tpu.core_type = #tpu.core_type<tc>, window_params = [{transform_indices = @transform_0, window_bounds = array<i64: 1, 128, 64>}, {transform_indices = @transform_1, window_bounds = array<i64: 1, 128, 64>}, {pipeline_mode = #tpu.pipeline_mode<synchronous>, transform_indices = @transform_2, window_bounds = array<i64: 128, 128>}, {pipeline_mode = #tpu.pipeline_mode<synchronous>, transform_indices = @transform_3, window_bounds = array<i64: 64, 1>}, {pipeline_mode = #tpu.pipeline_mode<synchronous>, transform_indices = @transform_4, window_bounds = array<i64: 64, 1>}, {transform_indices = @transform_5, window_bounds = array<i64: 1>}, {transform_indices = @transform_6, window_bounds = array<i64: 1, 2, 128>}, {transform_indices = @transform_7, window_bounds = array<i64: 1, 2, 64>}]} {
    %c0 = arith.constant 0 : index
    %c0_0 = arith.constant 0 : index
    %0 = vector.load %arg3[%c0, %c0_0] : memref<128x128xf32, #tpu.memory_space<vmem>>, vector<128x128xf32>
    %1 = vector.extract_strided_slice %0 {offsets = [0, 0], sizes = [64, 128], strides = [1, 1]} : vector<128x128xf32> to vector<64x128xf32>
    %c0_1 = arith.constant 0 : index
    %c0_2 = arith.constant 0 : index
    %2 = vector.load %arg4[%c0_1, %c0_2] : memref<64x1xf32, #tpu.memory_space<vmem>>, vector<64x1xf32>
    %c0_3 = arith.constant 0 : index
    %c0_4 = arith.constant 0 : index
    %3 = vector.load %arg5[%c0_3, %c0_4] : memref<64x1xf32, #tpu.memory_space<vmem>>, vector<64x1xf32>
    %c0_5 = arith.constant 0 : index
    %4 = memref.load %arg6[%c0_5] : memref<1xf32, #tpu.memory_space<smem>>
    %c0_6 = arith.constant 0 : index
    %c0_7 = arith.constant 0 : index
    %c0_8 = arith.constant 0 : index
    %5 = vector.load %arg1[%c0_6, %c0_7, %c0_8] : memref<1x128x64xf32, #tpu.memory_space<vmem>>, vector<1x128x64xf32>
    %6 = vector.shape_cast %5 : vector<1x128x64xf32> to vector<128x64xf32>
    %c0_9 = arith.constant 0 : index
    %c0_10 = arith.constant 0 : index
    %c0_11 = arith.constant 0 : index
    %7 = vector.load %arg2[%c0_9, %c0_10, %c0_11] : memref<1x128x64xf32, #tpu.memory_space<vmem>>, vector<1x128x64xf32>
    %8 = vector.shape_cast %7 : vector<1x128x64xf32> to vector<128x64xf32>
    %9 = arith.subf %8, %6 : vector<128x64xf32>
    %cst = arith.constant dense<0.000000e+00> : vector<64x64xf32>
    %10 = tpu.matmul %1, %6, %cst {dimension_numbers = #tpu.dot_dimension_numbers<[1], [0], [0], [1], [0, 0, 1, 1], [], []>} : vector<64x128xf32>, vector<128x64xf32>, vector<64x64xf32> -> vector<64x64xf32>
    %cst_12 = arith.constant dense<0.000000e+00> : vector<128x64xf32>
    %11 = tpu.matmul %0, %9, %cst_12 {dimension_numbers = #tpu.dot_dimension_numbers<[1], [0], [0], [1], [0, 0, 1, 1], [], []>} : vector<128x128xf32>, vector<128x64xf32>, vector<128x64xf32> -> vector<128x64xf32>
    %12 = vector.extract_strided_slice %11 {offsets = [64, 0], sizes = [64, 64], strides = [1, 1]} : vector<128x64xf32> to vector<64x64xf32>
    %13 = arith.addf %10, %12 : vector<64x64xf32>
    %14 = vector.broadcast %2 : vector<64x1xf32> to vector<64x64xf32>
    %15 = arith.addf %13, %14 : vector<64x64xf32>
    %16 = vector.extract_strided_slice %11 {offsets = [0, 0], sizes = [64, 64], strides = [1, 1]} : vector<128x64xf32> to vector<64x64xf32>
    %17 = arith.addf %15, %16 : vector<64x64xf32>
    %cst_13 = arith.constant 0.000000e+00 : f32
    %18 = vector.broadcast %cst_13 : f32 to vector<64x64xf32>
    %19 = arith.maximumf %15, %18 : vector<64x64xf32>
    %cst_14 = arith.constant 0.000000e+00 : f32
    %20 = vector.broadcast %cst_14 : f32 to vector<64x64xf32>
    %21 = arith.maximumf %17, %20 : vector<64x64xf32>
    %22 = vector.broadcast %3 : vector<64x1xf32> to vector<64x64xf32>
    %23 = arith.mulf %19, %22 : vector<64x64xf32>
    %cst_15 = arith.constant dense<0.000000e+00> : vector<64xf32>
    %24 = vector.multi_reduction <add>, %23, %cst_15 [0] : vector<64x64xf32> to vector<64xf32>
    %25 = vector.shape_cast %24 : vector<64xf32> to vector<1x64xf32>
    %26 = vector.broadcast %4 : f32 to vector<1x64xf32>
    %27 = arith.addf %25, %26 : vector<1x64xf32>
    %28 = arith.negf %27 : vector<1x64xf32>
    %29 = math.exp %28 : vector<1x64xf32>
    %cst_16 = arith.constant 1.000000e+00 : f32
    %30 = vector.broadcast %cst_16 : f32 to vector<1x64xf32>
    %31 = arith.addf %30, %29 : vector<1x64xf32>
    %32 = arith.divf %30, %31 : vector<1x64xf32>
    %33 = vector.broadcast %3 : vector<64x1xf32> to vector<64x64xf32>
    %34 = arith.mulf %21, %33 : vector<64x64xf32>
    %cst_17 = arith.constant dense<0.000000e+00> : vector<64xf32>
    %35 = vector.multi_reduction <add>, %34, %cst_17 [0] : vector<64x64xf32> to vector<64xf32>
    %36 = vector.shape_cast %35 : vector<64xf32> to vector<1x64xf32>
    %37 = vector.broadcast %4 : f32 to vector<1x64xf32>
    %38 = arith.addf %36, %37 : vector<1x64xf32>
    %39 = arith.negf %38 : vector<1x64xf32>
    %40 = math.exp %39 : vector<1x64xf32>
    %cst_18 = arith.constant 1.000000e+00 : f32
    %41 = vector.broadcast %cst_18 : f32 to vector<1x64xf32>
    %42 = arith.addf %41, %40 : vector<1x64xf32>
    %43 = arith.divf %41, %42 : vector<1x64xf32>
    %44 = tpu.concatenate %32, %43 in 0 : vector<1x64xf32>, vector<1x64xf32> -> vector<2x64xf32>
    %c0_19 = arith.constant 0 : index
    %c0_20 = arith.constant 0 : index
    %c0_21 = arith.constant 0 : index
    %45 = vector.load %arg8[%c0_19, %c0_20, %c0_21] : memref<1x2x64xf32, #tpu.memory_space<vmem>>, vector<1x2x64xf32>
    %46 = vector.shape_cast %45 : vector<1x2x64xf32> to vector<2x64xf32>
    %47 = vector.shape_cast %44 : vector<2x64xf32> to vector<1x2x64xf32>
    tpu.vector_store %arg8[%c0_19, %c0_20, %c0_21], %47 {strides = array<i32>} : memref<1x2x64xf32, #tpu.memory_space<vmem>>, vector<1x2x64xf32>,
    %48 = vector.broadcast %32 : vector<1x64xf32> to vector<128x64xf32>
    %49 = arith.mulf %6, %48 : vector<128x64xf32>
    %cst_22 = arith.constant dense<0.000000e+00> : vector<128xf32>
    %50 = vector.multi_reduction <add>, %49, %cst_22 [1] : vector<128x64xf32> to vector<128xf32>
    %51 = vector.broadcast %43 : vector<1x64xf32> to vector<128x64xf32>
    %52 = arith.mulf %8, %51 : vector<128x64xf32>
    %cst_23 = arith.constant dense<0.000000e+00> : vector<128xf32>
    %53 = vector.multi_reduction <add>, %52, %cst_23 [1] : vector<128x64xf32> to vector<128xf32>
    %54 = vector.shape_cast %50 : vector<128xf32> to vector<1x128xf32>
    %55 = vector.shape_cast %53 : vector<128xf32> to vector<1x128xf32>
    %56 = tpu.concatenate %54, %55 in 0 : vector<1x128xf32>, vector<1x128xf32> -> vector<2x128xf32>
    %c0_24 = arith.constant 0 : index
    %c0_25 = arith.constant 0 : index
    %c0_26 = arith.constant 0 : index
    %57 = vector.load %arg7[%c0_24, %c0_25, %c0_26] : memref<1x2x128xf32, #tpu.memory_space<vmem>>, vector<1x2x128xf32>
    %58 = vector.shape_cast %57 : vector<1x2x128xf32> to vector<2x128xf32>
    %59 = vector.shape_cast %56 : vector<2x128xf32> to vector<1x2x128xf32>
    tpu.vector_store %arg7[%c0_24, %c0_25, %c0_26], %59 {strides = array<i32>} : memref<1x2x128xf32, #tpu.memory_space<vmem>>, vector<1x2x128xf32>,
    return
  }
  func.func @transform_0(%arg0: i32) -> (i32, i32, i32) {
    %c0_i32 = arith.constant 0 : i32
    %c0_i32_0 = arith.constant 0 : i32
    %c0_i32_1 = arith.constant 0 : i32
    return %arg0, %c0_i32, %c0_i32_0 : i32, i32, i32
  }
  func.func @transform_1(%arg0: i32) -> (i32, i32, i32) {
    %c0_i32 = arith.constant 0 : i32
    %c0_i32_0 = arith.constant 0 : i32
    %c0_i32_1 = arith.constant 0 : i32
    return %arg0, %c0_i32, %c0_i32_0 : i32, i32, i32
  }
  func.func @transform_2(%arg0: i32) -> (i32, i32) {
    %c0_i32 = arith.constant 0 : i32
    %c0_i32_0 = arith.constant 0 : i32
    %c0_i32_1 = arith.constant 0 : i32
    return %c0_i32, %c0_i32_0 : i32, i32
  }
  func.func @transform_3(%arg0: i32) -> (i32, i32) {
    %c0_i32 = arith.constant 0 : i32
    %c0_i32_0 = arith.constant 0 : i32
    %c0_i32_1 = arith.constant 0 : i32
    return %c0_i32, %c0_i32_0 : i32, i32
  }
  func.func @transform_4(%arg0: i32) -> (i32, i32) {
    %c0_i32 = arith.constant 0 : i32
    %c0_i32_0 = arith.constant 0 : i32
    %c0_i32_1 = arith.constant 0 : i32
    return %c0_i32, %c0_i32_0 : i32, i32
  }
  func.func @transform_5(%arg0: i32) -> i32 {
    %c0_i32 = arith.constant 0 : i32
    %c0_i32_0 = arith.constant 0 : i32
    return %c0_i32 : i32
  }
  func.func @transform_6(%arg0: i32) -> (i32, i32, i32) {
    %c0_i32 = arith.constant 0 : i32
    %c0_i32_0 = arith.constant 0 : i32
    %c0_i32_1 = arith.constant 0 : i32
    return %arg0, %c0_i32, %c0_i32_0 : i32, i32, i32
  }
  func.func @transform_7(%arg0: i32) -> (i32, i32, i32) {
    %c0_i32 = arith.constant 0 : i32
    %c0_i32_0 = arith.constant 0 : i32
    %c0_i32_1 = arith.constant 0 : i32
    return %arg0, %c0_i32, %c0_i32_0 : i32, i32, i32
  }
}

</mosaic_0001>

<bundles_post_ra>
// kernel: squeeze.7
= control target key start
LH: loop header
LB: loop body
LE: loop exit
PB: predicated region body
PF: predicated region fallthrough
CT: control target
= control target key end

     0   :  { %s135_s0 = inlined_call_operand.vmem [shape: f32[2,64], index: 0, kind: input, shape index: {}]   ;;  %s136_s1 = inlined_call_operand.hbm [shape: f32[2,1,8,8], index: 1, kind: output, shape index: {}]  }
   0x1   :  { %v5_v0 = vld [vmem:[%s135_s0] sm:$0x3] }
   0x2   :  { %6 = vst [vmem:[#allocation2] sm:$0x3] %v5_v0 }
   0x3   :  { %2 = vsyncpa [#allocation1], 0  ;;  %s94_s0 = smov 120   ;;  %s95_s8 = smov 104   ;;  %vm8_vm0 = vcmask 64512  }
   0x4   :  { %s96_s9 = smov 112   ;;  %s97_s10 = smov 96  }
   0x5   :  { %s98_s11 = smov 88   ;;  %s99_s12 = smov 80  }
   0x6   :  { %s100_s13 = smov 72   ;;  %s101_s14 = smov [#allocation0]  }
   0x7   :  { %s56_s15 = sshll.u32 %s101_s14, 4  ;;  %s57_s15 = int_to_ptr.vmem [resolvable:$true] %s56_s15 }
   0x8   :  { %s70_s16 = scalar_lea.vmem %s57_s15, 256  ;;  %p75_p1 = scmp.lt.s32.totalorder %s57_s15, %s57_s15 }
   0x9   :  { %v10_v1 = vld [vmem:[#allocation2] sm:$0x3]   ;;  %p71_p0 = scmp.ne.s32.totalorder %s57_s15, %s70_s16  ;;  %p76_p2 = scmp.lt.s32.totalorder %s70_s16, %s70_s16 }
   0xa   :  { %v22_v2 = vld [vmem:[#allocation2] sm:$0x3]   ;;  %11 = vrot.lane.b32.xlu0 %v10_v1, %s94_s0 }
   0xb   :  { %23 = vrot.lane.b32.xlu1 %v22_v2, %s95_s8  ;;  %v16_v3 = vld [vmem:[#allocation2] sm:$0x3]   ;;  %p77_p3 = por %p76_p2, %p75_p1 }
   0xc   :  { %v28_v4 = vld [vmem:[#allocation2] sm:$0x3]  }
   0xd   :  { %v7_v5 = vld [vmem:[#allocation2] sm:$0x3]   ;;  %p78_p4 = pnand %p77_p3, %p71_p0 }
   0xe   :  { %9 = vst.msk [vmem:[#allocation0] ss:$8 sm:$0x3] %vm8_vm0, %v7_v5   ;;  %17 = vrot.lane.b32.xlu0 %v16_v3, %s96_s9  ;;  %v34_v6 = vld [vmem:[#allocation2] sm:$0x3]  }
   0xf   :  { %29 = vrot.lane.b32.xlu1 %v28_v4, %s97_s10  ;;  %v40_v7 = vld [vmem:[#allocation2] sm:$0x3]  }
  0x10   :  { %v46_v8 = vld [vmem:[#allocation2] sm:$0x3]  }
  0x12   :  { %35 = vrot.lane.b32.xlu0 %v34_v6, %s98_s11 }
  0x13   :  { %41 = vrot.lane.b32.xlu1 %v40_v7, %s99_s12 }
  0x16   :  { %47 = vrot.lane.b32.xlu0 %v46_v8, %s100_s13 }
  0x7c   :  { %v12_v9 = vpop.permute.xlu0 %11  }
  0x7d   :  { %v24_v10 = vpop.permute.xlu1 %23   ;;  %15 = vst.msk [vmem:[#allocation0 + $0x1] ss:$8 sm:$0x3] %vm8_vm0, %v12_v9  }
  0x7e   :  { %27 = vst.msk [vmem:[#allocation0 + $0x3] ss:$8 sm:$0x3] %vm8_vm0, %v24_v10  }
  0x80   :  { %v18_v11 = vpop.permute.xlu0 %17  }
  0x81   :  { %v30_v12 = vpop.permute.xlu1 %29   ;;  %21 = vst.msk [vmem:[#allocation0 + $0x2] ss:$8 sm:$0x3] %vm8_vm0, %v18_v11  }
  0x82   :  { %33 = vst.msk [vmem:[#allocation0 + $0x4] ss:$8 sm:$0x3] %vm8_vm0, %v30_v12  }
  0x84   :  { %v36_v13 = vpop.permute.xlu0 %35  }
  0x85   :  { %v42_v14 = vpop.permute.xlu1 %41   ;;  %39 = vst.msk [vmem:[#allocation0 + $0x5] ss:$8 sm:$0x3] %vm8_vm0, %v36_v13  }
  0x86   :  { %45 = vst.msk [vmem:[#allocation0 + $0x6] ss:$8 sm:$0x3] %vm8_vm0, %v42_v14  }
  0x88   :  { %v48_v15 = vpop.permute.xlu0 %47  }
  0x89   :  { %51 = vst.msk [vmem:[#allocation0 + $0x7] ss:$8 sm:$0x3] %vm8_vm0, %v48_v15  }
  0x8a   :  { %81 = shalt.err (!%p78_p4)
}
  0x8b   :  { %s82_s19 = scalar_lea.hbm %s136_s1, 256 }
  0x8c   :  { %p83_p5 = scmp.ne.s32.totalorder %s136_s1, %s82_s19  ;;  %p86_p6 = scmp.lt.u32.totalorder %s82_s19, %s136_s1 }
  0x8e   :  { %p88_p7 = pnand %p86_p6, %p83_p5 }
  0x90   :  { %91 = shalt.err (!%p88_p7)
}
  0x91   :  { %59 = dma.vmem_to_hbm [thread:$0]  %s57_s15, 256, %s136_s1, [#allocation1]  }
  0x92   :  { %92 = dma.done.wait [#allocation1], 256  }
  0x93   :  { %93 = vsyncadd [#allocation1], 4294967040 }
  0x94   :  { %61 = vsyncpa [#allocation1], 1 }

// kernel: dual_attention.1
= control target key start
LH: loop header
LB: loop body
LE: loop exit
PB: predicated region body
PF: predicated region fallthrough
CT: control target
= control target key end

     0   :  { %s1596_s26 = smov 0   ;;  %s2133_s0 = inlined_call_operand.vmem [shape: f32[2,128,64], index: 0, kind: input, shape index: {}]   ;;  %s2134_s1 = inlined_call_operand.vmem [shape: f32[2,128,64], index: 1, kind: input, shape index: {}]   ;;  %s2135_s2 = inlined_call_operand.vmem [shape: f32[128,128], index: 2, kind: input, shape index: {}]   ;;  %s2136_s3 = inlined_call_operand.vmem [shape: f32[64,1], index: 3, kind: input, shape index: {}]   ;;  %s2137_s4 = inlined_call_operand.vmem [shape: f32[64,1], index: 4, kind: input, shape index: {}]   ;;  %s2138_s5 = inlined_call_operand.<no memory space> [shape: f32[1], index: 5, kind: input, shape index: {}]   ;;  %s2139_s6 = inlined_call_operand.vmem [shape: f32[2,2,128], index: 6, kind: output, shape index: {0}]   ;;  %s2140_s7 = inlined_call_operand.vmem [shape: f32[2,2,64], index: 7, kind: output, shape index: {1}]  }
   0x1   :  { %13 = sst [smem:[#allocation2]] %s2138_s5 }
   0x2 LB: > { %s1280_s27 = sadd.s32 4294967295, %s1550_s26   ;;  %p1284_p0 = scmp.ge.s32.totalorder %s1550_s26, 1  ;;  %s1550_s26 = sphi %s1596_s26, %s19_s26  }
   0x3   : > { %p251_p1 = scmp.lt.s32.totalorder %s1550_s26, 3 }
   0x5   : > { %p252_p2 = pnand %p1284_p0, %p251_p1 }
   0x7   : > { %255 = sbr.rel (%p252_p2) target bundleno = 568 (0x238), region = 44 }
   0xe   : > { %p291_p3 = scmp.lt.s32.totalorder %s1280_s27, 1  ;;  %v309_v0 = vld [vmem:[%s2135_s2] sm:$0xff]  ;;  %v1552_v1 = vmov 0   ;;  %v327_v3 = vld [vmem:[%s2136_s3 + $0x10] sm:$0xff]  ;;  %v326_v39 = vld [vmem:[%s2136_s3 + $0x8] sm:$0xff]  ;;  %vm760_vm0 = vcmask 523264  }
   0xf   : > { %1385 = vmatprep.mubr.f32.mxu1 %v309_v0  ;;  %1441 = vmatprep.mubr.f32.mxu0 %v309_v0  ;;  %v325_v2 = vld [vmem:[%s2136_s3] sm:$0xff]  ;;  %v328_v40 = vld [vmem:[%s2136_s3 + $0x18] sm:$0xff]  ;;  %v334_v55 = vld [vmem:[%s2137_s4 + $0x8] sm:$0xff]  ;;  %s341_s10 = sld [smem:[#allocation2]]  ;;  %vm826_vm1 = vcmask 1040384   ;;  %vm828_vm2 = vcmask 517120  }
  0x10   : > { %s2175_s27 = smov (!%p291_p3, %s1280_s27), 1  ;;  %1534 = vset.pattern.permute.xlu0 %v1552_v1  ;;  %1535 = vset.pattern.permute.xlu1 %v1552_v1  ;;  %v329_v45 = vld [vmem:[%s2136_s3 + $0x20] sm:$0xff]  ;;  %v330_v60 = vld [vmem:[%s2136_s3 + $0x28] sm:$0xff]  ;;  %v335_v1 = vld [vmem:[%s2137_s4 + $0x10] sm:$0xff]  ;;  %vm985_vm3 = vcmask 130112   ;;  %vm992_vm4 = vcmask 195712  }
  0x11   : > { %s1295_s5 = sshll.u32 %s2175_s27, 7  ;;  %642 = vperm.xlu0 %1534, %v325_v2   ;;  %652 = vperm.xlu1 %1535, %v327_v3   ;;  %v333_v50 = vld [vmem:[%s2137_s4] sm:$0xff]  ;;  %s1289_s11 = sshll.u32 %s2175_s27, 1  ;;  %vm999_vm5 = vcmask 261312   ;;  %vm1006_vm6 = vcmask 326912   ;;  %vm1013_vm7 = vcmask 392512  }
  0x12   : > { %s1613_s9 = scalar_lea.vmem %s2133_s0, %s1295_s5  ;;  %s1618_s12 = scalar_lea.vmem %s2134_s1, %s1295_s5  ;;  %vm1020_vm8 = vcmask 458112   ;;  %vm1027_vm9 = vcmask 523712   ;;  %vm1034_vm10 = vcmask 589312   ;;  %vm1041_vm11 = vcmask 654912  }
  0x13   : > { %v1627_v4 = vld [vmem:[%s1613_s9] sm:$0xff]  ;;  %v1630_v5 = vld [vmem:[%s1613_s9 + $0x8] sm:$0xff]  ;;  %v1641_v9 = vld [vmem:[%s1613_s9 + $0x10] sm:$0xff]  ;;  %s308_s13 = scalar_lea.vmem %s2140_s7, %s1289_s11  ;;  %vm1048_vm12 = vcmask 720512   ;;  %vm1055_vm13 = vcmask 786112   ;;  %vm1062_vm14 = vcmask 851712   ;;  %s304_s16 = scalar_lea.vmem %s2139_s6, %s1289_s11 }
  0x14   : > { %v1633_v6 = vld [vmem:[%s1618_s12] sm:$0xff]  ;;  %v1636_v7 = vld [vmem:[%s1618_s12 + $0x8] sm:$0xff]  ;;  %v1644_v10 = vld [vmem:[%s1613_s9 + $0x18] sm:$0xff]  ;;  %v1485_v11 = vpack.c.bf16 %v1630_v5, %v1627_v4  ;;  %vm1069_vm15 = vcmask 917312  }
  0x15   : > { %v374_v8 = vsub.f32 %v1633_v6, %v1627_v4  ;;  %v375_v12 = vsub.f32 %v1636_v7, %v1630_v5  ;;  %v1651_v13 = vld [vmem:[%s1618_s12 + $0x10] sm:$0xff]  ;;  %v1654_v14 = vld [vmem:[%s1618_s12 + $0x18] sm:$0xff]  ;;  %v1657_v15 = vld [vmem:[%s1613_s9 + $0x20] sm:$0xff]  ;;  %v1489_v16 = vpack.c.bf16 %v1644_v10, %v1641_v9  ;;  %647 = vperm.xlu0 %1534, %v326_v39   ;;  %657 = vperm.xlu1 %1535, %v328_v40  }
  0x16   : > { %v376_v17 = vsub.f32 %v1651_v13, %v1641_v9  ;;  %v377_v18 = vsub.f32 %v1654_v14, %v1644_v10  ;;  %v1666_v19 = vld [vmem:[%s1613_s9 + $0x28] sm:$0xff]  ;;  %v1669_v20 = vld [vmem:[%s1618_s12 + $0x20] sm:$0xff]  ;;  %1486 = vmatprep.subr.bf16.mxu0 %v1485_v11  ;;  %v1679_v25 = vld [vmem:[%s1613_s9 + $0x30] sm:$0xff] }
  0x17   : > { %v1672_v21 = vld [vmem:[%s1618_s12 + $0x28] sm:$0xff]  ;;  %v1453_v22 = vpack.c.bf16 %v375_v12, %v374_v8  ;;  %v378_v23 = vsub.f32 %v1669_v20, %v1657_v15  ;;  %1488 = vmatpush3.bf16.msra.mxu0 %v1485_v11  ;;  %v1682_v27 = vld [vmem:[%s1613_s9 + $0x38] sm:$0xff]  ;;  %v1685_v28 = vld [vmem:[%s1618_s12 + $0x30] sm:$0xff]  ;;  %v1493_v30 = vpack.c.bf16 %v1666_v19, %v1657_v15 }
  0x18   : > { %v379_v24 = vsub.f32 %v1672_v21, %v1666_v19  ;;  %v1457_v26 = vpack.c.bf16 %v377_v18, %v376_v17  ;;  %v1688_v29 = vld [vmem:[%s1618_s12 + $0x38] sm:$0xff]  ;;  %1490 = vmatprep.subr.bf16.mxu0 %v1489_v16  ;;  %v380_v32 = vsub.f32 %v1685_v28, %v1679_v25  ;;  %v1697_v34 = vld [vmem:[%s1613_s9 + $0x40] sm:$0xff]  ;;  %v1700_v35 = vld [vmem:[%s1613_s9 + $0x48] sm:$0xff]  ;;  %v1497_v38 = vpack.c.bf16 %v1682_v27, %v1679_v25 }
  0x19   : > { %1454 = vmatprep.subr.bf16.mxu1 %v1453_v22  ;;  %v381_v33 = vsub.f32 %v1688_v29, %v1682_v27  ;;  %v1703_v36 = vld [vmem:[%s1618_s12 + $0x40] sm:$0xff]  ;;  %v1706_v37 = vld [vmem:[%s1618_s12 + $0x48] sm:$0xff]  ;;  %v1721_v44 = vld [vmem:[%s1613_s9 + $0x50] sm:$0xff]  ;;  %v1501_v49 = vpack.c.bf16 %v1700_v35, %v1697_v34  ;;  %662 = vperm.xlu0 %1534, %v329_v45  }
  0x1a   : > { %1456 = vmatpush3.bf16.msra.mxu1 %v1453_v22  ;;  %v1461_v31 = vpack.c.bf16 %v379_v24, %v378_v23  ;;  %2152 = vst [vmem:[#allocation3_spill] sm:$0xff] %v1706_v37  ;;  %v382_v42 = vsub.f32 %v1703_v36, %v1697_v34  ;;  %v383_v43 = vsub.f32 %v1706_v37, %v1700_v35  ;;  %v1727_v46 = vld [vmem:[%s1613_s9 + $0x58] sm:$0xff]  ;;  %v1730_v47 = vld [vmem:[%s1618_s12 + $0x50] sm:$0xff]  ;;  %v1745_v54 = vld [vmem:[%s1613_s9 + $0x60] sm:$0xff] }
  0x1b   : > { %1458 = vmatprep.subr.bf16.mxu1 %v1457_v26  ;;  %1492 = vmatpush3.bf16.msra.mxu0 %v1489_v16  ;;  %v1465_v41 = vpack.c.bf16 %v381_v33, %v380_v32  ;;  %2153 = vst [vmem:[#allocation4_spill] sm:$0xff] %v1730_v47  ;;  %v1733_v48 = vld [vmem:[%s1618_s12 + $0x58] sm:$0xff]  ;;  %v384_v52 = vsub.f32 %v1730_v47, %v1721_v44  ;;  %2155 = vst [vmem:[#allocation6_spill] sm:$0xff] %v1745_v54  ;;  %v1751_v56 = vld [vmem:[%s1613_s9 + $0x68] sm:$0xff] }
  0x1c   : > { %1494 = vmatprep.subr.bf16.mxu0 %v1493_v30  ;;  %2154 = vst [vmem:[#allocation5_spill] sm:$0xff] %v1733_v48  ;;  %v1469_v51 = vpack.c.bf16 %v383_v43, %v382_v42  ;;  %v385_v53 = vsub.f32 %v1733_v48, %v1727_v46  ;;  %2156 = vst [vmem:[#allocation7_spill] sm:$0xff] %v1751_v56  ;;  %v1754_v57 = vld [vmem:[%s1618_s12 + $0x60] sm:$0xff]  ;;  %v1757_v58 = vld [vmem:[%s1618_s12 + $0x68] sm:$0xff]  ;;  %v1505_v59 = vpack.c.bf16 %v1727_v46, %v1721_v44 }
  0x1d   : > { %2157 = vst [vmem:[#allocation8_spill] sm:$0xff] %v1754_v57  ;;  %2158 = vst [vmem:[#allocation9_spill] sm:$0xff] %v1757_v58  ;;  %714 = vperm.xlu1 %1535, %v333_v50   ;;  %719 = vperm.xlu0 %1534, %v334_v55   ;;  %v386_v62 = vsub.f32 %v1754_v57, %v1745_v54  ;;  %v387_v63 = vsub.f32 %v1757_v58, %v1751_v56  ;;  %v1769_v0 = vld [vmem:[%s1613_s9 + $0x70] sm:$0xff]  ;;  %v1775_v2 = vld [vmem:[%s1613_s9 + $0x78] sm:$0xff] }
  0x1e   : > { %1460 = vmatpush3.bf16.msra.mxu1 %v1457_v26  ;;  %v1473_v61 = vpack.c.bf16 %v385_v53, %v384_v52  ;;  %2159 = vst [vmem:[#allocation10_spill] sm:$0xff] %v1769_v0  ;;  %2160 = vst [vmem:[#allocation11_spill] sm:$0xff] %v1775_v2  ;;  %v1778_v3 = vld [vmem:[%s1618_s12 + $0x70] sm:$0xff]  ;;  %v1781_v8 = vld [vmem:[%s1618_s12 + $0x78] sm:$0xff]  ;;  %v1509_v11 = vpack.c.bf16 %v1751_v56, %v1745_v54  ;;  %v1513_v23 = vpack.c.bf16 %v1775_v2, %v1769_v0 }
  0x1f   : > { %1462 = vmatprep.subr.bf16.mxu1 %v1461_v31  ;;  %1496 = vmatpush3.bf16.msra.mxu0 %v1493_v30  ;;  %2161 = vst [vmem:[#allocation12_spill] sm:$0xff] %v1778_v3  ;;  %2162 = vst [vmem:[#allocation13_spill] sm:$0xff] %v1781_v8  ;;  %v331_v12 = vld [vmem:[%s2136_s3 + $0x30] sm:$0xff]  ;;  %v1477_v16 = vpack.c.bf16 %v387_v63, %v386_v62  ;;  %v388_v17 = vsub.f32 %v1778_v3, %v1769_v0  ;;  %v336_v22 = vld [vmem:[%s2137_s4 + $0x18] sm:$0xff] }
  0x20   : > { %1498 = vmatprep.subr.bf16.mxu0 %v1497_v38  ;;  %v389_v18 = vsub.f32 %v1781_v8, %v1775_v2  ;;  %v332_v24 = vld [vmem:[%s2136_s3 + $0x38] sm:$0xff]  ;;  %v337_v30 = vld [vmem:[%s2137_s4 + $0x20] sm:$0xff]  ;;  %v339_v32 = vld [vmem:[%s2137_s4 + $0x30] sm:$0xff] }
  0x21   : > { %667 = vperm.xlu1 %1535, %v330_v60   ;;  %724 = vperm.xlu0 %1534, %v335_v1   ;;  %v310_v33 = vld [vmem:[%s2135_s2 + $0x8] sm:$0xff]  ;;  %v311_v39 = vld [vmem:[%s2135_s2 + $0x10] sm:$0xff]  ;;  %v312_v40 = vld [vmem:[%s2135_s2 + $0x18] sm:$0xff] }
  0x22   : > { %1464 = vmatpush3.bf16.msra.mxu1 %v1461_v31  ;;  %v1481_v26 = vpack.c.bf16 %v389_v18, %v388_v17  ;;  %v338_v31 = vld [vmem:[%s2137_s4 + $0x28] sm:$0xff]  ;;  %v315_v43 = vld [vmem:[%s2135_s2 + $0x30] sm:$0xff]  ;;  %v316_v45 = vld [vmem:[%s2135_s2 + $0x38] sm:$0xff] }
  0x23   : > { %1466 = vmatprep.subr.bf16.mxu1 %v1465_v41  ;;  %1500 = vmatpush3.bf16.msra.mxu0 %v1497_v38  ;;  %v340_v38 = vld [vmem:[%s2137_s4 + $0x38] sm:$0xff]  ;;  %v314_v42 = vld [vmem:[%s2135_s2 + $0x28] sm:$0xff]  ;;  %v321_v53 = vld [vmem:[%s2135_s2 + $0x60] sm:$0xff] }
  0x24   : > { %1502 = vmatprep.subr.bf16.mxu0 %v1501_v49  ;;  %v318_v50 = vld [vmem:[%s2135_s2 + $0x48] sm:$0xff]  ;;  %v320_v52 = vld [vmem:[%s2135_s2 + $0x58] sm:$0xff] }
  0x25   : > { %672 = vperm.xlu1 %1535, %v331_v12   ;;  %729 = vperm.xlu0 %1534, %v336_v22   ;;  %v322_v55 = vld [vmem:[%s2135_s2 + $0x68] sm:$0xff]  ;;  %v324_v60 = vld [vmem:[%s2135_s2 + $0x78] sm:$0xff] }
  0x26   : > { %1468 = vmatpush3.bf16.msra.mxu1 %v1465_v41  ;;  %v313_v41 = vld [vmem:[%s2135_s2 + $0x20] sm:$0xff] }
  0x27   : > { %1470 = vmatprep.subr.bf16.mxu1 %v1469_v51  ;;  %1504 = vmatpush3.bf16.msra.mxu0 %v1501_v49  ;;  %v317_v49 = vld [vmem:[%s2135_s2 + $0x40] sm:$0xff] }
  0x28   : > { %1506 = vmatprep.subr.bf16.mxu0 %v1505_v59 }
  0x29   : > { %677 = vperm.xlu1 %1535, %v332_v24   ;;  %734 = vperm.xlu0 %1534, %v337_v30  }
  0x2a   : > { %1472 = vmatpush3.bf16.msra.mxu1 %v1469_v51  ;;  %v319_v51 = vld [vmem:[%s2135_s2 + $0x50] sm:$0xff] }
  0x2b   : > { %1474 = vmatprep.subr.bf16.mxu1 %v1473_v61  ;;  %1508 = vmatpush3.bf16.msra.mxu0 %v1505_v59  ;;  %v323_v59 = vld [vmem:[%s2135_s2 + $0x70] sm:$0xff] }
  0x2c   : > { %1510 = vmatprep.subr.bf16.mxu0 %v1509_v11 }
  0x2d   : > { %739 = vperm.xlu1 %1535, %v338_v31   ;;  %744 = vperm.xlu0 %1534, %v339_v32  }
  0x2e   : > { %1476 = vmatpush3.bf16.msra.mxu1 %v1473_v61 }
  0x2f   : > { %1478 = vmatprep.subr.bf16.mxu1 %v1477_v16  ;;  %1512 = vmatpush3.bf16.msra.mxu0 %v1509_v11 }
  0x30   : > { %1514 = vmatprep.subr.bf16.mxu0 %v1513_v23 }
  0x31   : > { %749 = vperm.xlu1 %1535, %v340_v38  }
  0x32   : > { %1480 = vmatpush3.bf16.msra.mxu1 %v1477_v16 }
  0x33   : > { %1482 = vmatprep.subr.bf16.mxu1 %v1481_v26  ;;  %1516 = vmatpush3.bf16.msra.mxu0 %v1513_v23 }
  0x36   : > { %1484 = vmatpush3.bf16.msra.mxu1 %v1481_v26  ;;  %1442 = vmatmul.mubr.f32.vlgmr.msra.gmra.mrb[0].mxu0 %v310_v33 }
  0x37   : > { %1444 = vmatprep.mubr.f32.mxu0 %v311_v39 }
  0x39   : > { %1386 = vmatmul.mubr.f32.vlgmr.msra.gmra.mrb[0].mxu1 %v310_v33 }
  0x3a   : > { %1388 = vmatprep.mubr.f32.mxu1 %v311_v39  ;;  %1445 = vmatmul.mubr.f32.gmra.mrb[2].mxu0 %v312_v40 }
  0x3b   : > { %1447 = vmatprep.mubr.f32.mxu0 %v313_v41 }
  0x3d   : > { %1389 = vmatmul.mubr.f32.gmra.mrb[2].mxu1 %v312_v40 }
  0x3e   : > { %1391 = vmatprep.mubr.f32.mxu1 %v313_v41  ;;  %1448 = vmatmul.mubr.f32.gmra.mrb[4].mxu0 %v314_v42 }
  0x3f   : > { %1450 = vmatprep.mubr.f32.mxu0 %v315_v43 }
  0x41   : > { %1392 = vmatmul.mubr.f32.gmra.mrb[4].mxu1 %v314_v42 }
  0x42   : > { %1394 = vmatprep.mubr.f32.mxu1 %v315_v43  ;;  %1451 = vmatmul.mubr.f32.gmra.mrb[6].mxu0 %v316_v45 }
  0x45   : > { %1395 = vmatmul.mubr.f32.gmra.mrb[6].mxu1 %v316_v45 }
  0x46   : > { %1397 = vmatprep.mubr.f32.mxu1 %v317_v49 }
  0x49   : > { %1398 = vmatmul.mubr.f32.gmra.mrb[8].mxu1 %v318_v50 }
  0x4a   : > { %1400 = vmatprep.mubr.f32.mxu1 %v319_v51 }
  0x4d   : > { %1401 = vmatmul.mubr.f32.gmra.mrb[10].mxu1 %v320_v52 }
  0x4e   : > { %1403 = vmatprep.mubr.f32.mxu1 %v321_v53 }
  0x51   : > { %1404 = vmatmul.mubr.f32.gmra.mrb[12].mxu1 %v322_v55 }
  0x52   : > { %1406 = vmatprep.mubr.f32.mxu1 %v323_v59 }
  0x55   : > { %1407 = vmatmul.mubr.f32.gmra.mrb[14].mxu1 %v324_v60 }
  0x90   : > { %v643_v61 = vpop.permute.xlu0 %642  ;;  %v653_v62 = vpop.permute.xlu1 %652 }
  0x94   : > { %v648_v11 = vpop.permute.xlu0 %647  ;;  %v658_v18 = vpop.permute.xlu1 %657 }
  0x98   : > { %v1857_v31 = vpop.permute.xlu0 %662 }
  0x9c   : > { %v715_v32 = vpop.permute.xlu1 %714  ;;  %v720_v42 = vpop.permute.xlu0 %719 }
  0xa0   : > { %v668_v45 = vpop.permute.xlu1 %667  ;;  %v725_v53 = vpop.permute.xlu0 %724 }
  0xa4   : > { %v1867_v59 = vpop.permute.xlu1 %672 }
 0x109   : > { %v1443_v63 = vpop.f32.mrb[0].mxu0 }
 0x10a   : > { %v601_v1 = vpop.f32.mrb[1].mxu0 }
 0x10c   : > { %v1387_v12 = vpop.f32.mrb[0].mxu1 }
 0x10d   : > { %v456_v16 = vpop.f32.mrb[1].mxu1  ;;  %v1446_v17 = vpop.f32.mrb[2].mxu0 }
 0x10e   : > { %v611_v22 = vpop.f32.mrb[3].mxu0 }
 0x110   : > { %v1390_v23 = vpop.f32.mrb[2].mxu1 }
 0x111   : > { %v466_v24 = vpop.f32.mrb[3].mxu1  ;;  %v1449_v26 = vpop.f32.mrb[4].mxu0 }
 0x112   : > { %v621_v30 = vpop.f32.mrb[5].mxu0 }
 0x114   : > { %v1859_v33 = vpop.f32.mrb[4].mxu1 }
 0x115   : > { %v1861_v38 = vpop.f32.mrb[5].mxu1  ;;  %v1452_v39 = vpop.f32.mrb[6].mxu0 }
 0x116   : > { %v631_v40 = vpop.f32.mrb[7].mxu0 }
 0x118   : > { %v1863_v41 = vpop.f32.mrb[6].mxu1 }
 0x119   : > { %v1865_v43 = vpop.f32.mrb[7].mxu1 }
 0x11c   : > { %v1399_v49 = vpop.f32.mrb[8].mxu1 }
 0x11d   : > { %v607_v50 = vadd.f32 %v1443_v63, %v1399_v49  ;;  %v496_v51 = vpop.f32.mrb[9].mxu1 }
 0x11e   : > { %v602_v52 = vadd.f32 %v601_v1, %v496_v51 }
 0x11f   : > { %v681_v55 = vadd.f32 %v648_v11, %v607_v50 }
 0x120   : > { %v680_v60 = vadd.f32 %v643_v61, %v602_v52  ;;  %v1402_v8 = vpop.f32.mrb[10].mxu1 }
 0x121   : > { %v689_v3 = vadd.f32 %v1387_v12, %v681_v55  ;;  %v697_v58 = vmax.f32 %v681_v55, 0.0  ;;  %v617_v2 = vadd.f32 %v1446_v17, %v1402_v8  ;;  %v506_v57 = vpop.f32.mrb[11].mxu1  ;;  %v730_v55 = vpop.permute.xlu0 %729 }
 0x122   : > { %v688_v0 = vadd.f32 %v680_v60, %v456_v16  ;;  %v696_v48 = vmax.f32 %v680_v60, 0.0  ;;  %v612_v56 = vadd.f32 %v611_v22, %v506_v57  ;;  %v678_v8 = vpop.permute.xlu1 %677 }
 0x123   : > { %v705_v47 = vmax.f32 %v689_v3, 0.0  ;;  %v753_v54 = vmul.f32 %v720_v42, %v697_v58  ;;  %v683_v37 = vadd.f32 %v658_v18, %v617_v2 }
 0x124   : > { %v704_v63 = vmax.f32 %v688_v0, 0.0  ;;  %v752_v49 = vmul.f32 %v715_v32, %v696_v48  ;;  %v682_v1 = vadd.f32 %v653_v62, %v612_v56  ;;  %v1405_v51 = vpop.f32.mrb[12].mxu1 }
 0x125   : > { %v762_v11 = vsel %vm760_vm0, %v753_v54, 0.0  ;;  %v791_v50 = vmul.f32 %v720_v42, %v705_v47  ;;  %v691_v61 = vadd.f32 %v1390_v23, %v683_v37  ;;  %v699_v52 = vmax.f32 %v683_v37, 0.0  ;;  %v516_v12 = vpop.f32.mrb[13].mxu1 }
 0x126   : > { %v761_v17 = vsel %vm760_vm0, %v752_v49, 0.0  ;;  %v790_v16 = vmul.f32 %v715_v32, %v704_v63  ;;  %v690_v60 = vadd.f32 %v682_v1, %v466_v24  ;;  %v698_v57 = vmax.f32 %v682_v1, 0.0 }
 0x127   : > { %v799_v58 = vsel %vm760_vm0, %v791_v50, 0.0  ;;  %v763_v2 = vadd.f32 %v762_v11, %v761_v17  ;;  %v707_v0 = vmax.f32 %v691_v61, 0.0  ;;  %v755_v48 = vmul.f32 %v730_v55, %v699_v52  ;;  %v735_v52 = vpop.permute.xlu0 %734 }
 0x128   : > { %v798_v56 = vsel %vm760_vm0, %v790_v16, 0.0  ;;  %v706_v3 = vmax.f32 %v690_v60, 0.0  ;;  %v754_v54 = vmul.f32 %v725_v53, %v698_v57  ;;  %v627_v47 = vadd.f32 %v1449_v26, %v1405_v51  ;;  %v1408_v62 = vpop.f32.mrb[14].mxu1  ;;  %v740_v26 = vpop.permute.xlu1 %739 }
 0x129   : > { %v800_v37 = vadd.f32 %v799_v58, %v798_v56  ;;  %v766_v18 = vsel %vm760_vm0, %v755_v48, 0.0  ;;  %v793_v22 = vmul.f32 %v730_v55, %v707_v0  ;;  %v622_v23 = vadd.f32 %v621_v30, %v516_v12  ;;  %v526_v42 = vpop.f32.mrb[15].mxu1 }
 0x12a   : > { %v764_v24 = vsel %vm760_vm0, %v754_v54, 0.0  ;;  %v792_v32 = vmul.f32 %v725_v53, %v706_v3  ;;  %v685_v63 = vadd.f32 %v668_v45, %v627_v47  ;;  %v637_v49 = vadd.f32 %v1452_v39, %v1408_v62 }
 0x12b   : > { %v803_v1 = vsel %vm760_vm0, %v793_v22, 0.0  ;;  %v765_v11 = vadd.f32 %v764_v24, %v763_v2  ;;  %v684_v50 = vadd.f32 %v1857_v31, %v622_v23  ;;  %v632_v61 = vadd.f32 %v631_v40, %v526_v42  ;;  %v745_v54 = vpop.permute.xlu0 %744 }
 0x12c   : > { %v801_v51 = vsel %vm760_vm0, %v792_v32, 0.0  ;;  %v693_v17 = vadd.f32 %v1859_v33, %v685_v63  ;;  %v701_v55 = vmax.f32 %v685_v63, 0.0  ;;  %v687_v30 = vadd.f32 %v678_v8, %v637_v49  ;;  %v750_v47 = vpop.permute.xlu1 %749 }
 0x12d   : > { %v802_v12 = vadd.f32 %v801_v51, %v800_v37  ;;  %v692_v16 = vadd.f32 %v684_v50, %v1861_v38  ;;  %v700_v53 = vmax.f32 %v684_v50, 0.0  ;;  %v767_v45 = vadd.f32 %v766_v18, %v765_v11 }
 0x12e   : > { %v709_v39 = vmax.f32 %v693_v17, 0.0  ;;  %v757_v60 = vmul.f32 %v740_v26, %v701_v55  ;;  %v695_v57 = vadd.f32 %v1863_v41, %v687_v30  ;;  %v703_v58 = vmax.f32 %v687_v30, 0.0 }
 0x12f   : > { %v708_v31 = vmax.f32 %v692_v16, 0.0  ;;  %v756_v40 = vmul.f32 %v735_v52, %v700_v53  ;;  %v804_v2 = vadd.f32 %v803_v1, %v802_v12  ;;  %v686_v0 = vadd.f32 %v1867_v59, %v632_v61 }
 0x130   : > { %v795_v48 = vmul.f32 %v740_v26, %v709_v39  ;;  %v711_v56 = vmax.f32 %v695_v57, 0.0  ;;  %v770_v62 = vsel %vm760_vm0, %v757_v60, 0.0  ;;  %v759_v18 = vmul.f32 %v750_v47, %v703_v58 }
 0x131   : > { %v768_v33 = vsel %vm760_vm0, %v756_v40, 0.0  ;;  %v794_v8 = vmul.f32 %v735_v52, %v708_v31  ;;  %v694_v3 = vadd.f32 %v686_v0, %v1865_v43  ;;  %v702_v38 = vmax.f32 %v686_v0, 0.0 }
 0x132   : > { %v769_v37 = vadd.f32 %v768_v33, %v767_v45  ;;  %v807_v24 = vsel %vm760_vm0, %v795_v48, 0.0  ;;  %v797_v32 = vmul.f32 %v750_v47, %v711_v56  ;;  %v774_v11 = vsel %vm760_vm0, %v759_v18, 0.0 }
 0x133   : > { %v805_v41 = vsel %vm760_vm0, %v794_v8, 0.0  ;;  %v710_v22 = vmax.f32 %v694_v3, 0.0  ;;  %v758_v23 = vmul.f32 %v745_v54, %v702_v38  ;;  %v782_v57 = vstv %s341_s10 }
 0x134   : > { %v806_v42 = vadd.f32 %v805_v41, %v804_v2  ;;  %v771_v59 = vadd.f32 %v770_v62, %v769_v37  ;;  %v811_v26 = vsel %vm760_vm0, %v797_v32, 0.0 }
 0x135   : > { %v772_v63 = vsel %vm760_vm0, %v758_v23, 0.0  ;;  %v796_v49 = vmul.f32 %v745_v54, %v710_v22 }
 0x136   : > { %v773_v43 = vadd.f32 %v772_v63, %v771_v59  ;;  %v808_v1 = vadd.f32 %v807_v24, %v806_v42 }
 0x137   : > { %v809_v50 = vsel %vm760_vm0, %v796_v49, 0.0 }
 0x138   : > { %v775_v61 = vadd.f32 %v774_v11, %v773_v43  ;;  %v810_v52 = vadd.f32 %v809_v50, %v808_v1 }
 0x13a   : > { %v776_v51 = vrot.slane %v775_v61, 4  ;;  %v812_v17 = vadd.f32 %v811_v26, %v810_v52 }
 0x13c   : > { %v777_v55 = vadd.f32 %v776_v51, %v775_v61  ;;  %v813_v30 = vrot.slane %v812_v17, 4 }
 0x13e   : > { %v778_v12 = vrot.slane %v777_v55, 2  ;;  %v814_v16 = vadd.f32 %v813_v30, %v812_v17 }
 0x140   : > { %v779_v53 = vadd.f32 %v778_v12, %v777_v55  ;;  %v815_v45 = vrot.slane %v814_v16, 2 }
 0x142   : > { %v780_v39 = vrot.slane %v779_v53, 1  ;;  %v816_v60 = vadd.f32 %v815_v45, %v814_v16  ;;  %v2163_v16 = vld [vmem:[#allocation3_spill] sm:$0xff] }
 0x144   : > { %v781_v58 = vadd.f32 %v780_v39, %v779_v53  ;;  %v817_v31 = vrot.slane %v816_v60, 1  ;;  %v2164_v39 = vld [vmem:[#allocation6_spill] sm:$0xff] }
 0x146   : > { %v783_v40 = vadd.f32 %v782_v57, %v781_v58  ;;  %v818_v2 = vadd.f32 %v817_v31, %v816_v60  ;;  %v2165_v60 = vld [vmem:[#allocation4_spill] sm:$0xff]  ;;  %v2166_v31 = vld [vmem:[#allocation7_spill] sm:$0xff] }
 0x148   : > { %v1291_v0 = vmul.f32 -1.442695, %v783_v40  ;;  %v819_v48 = vadd.f32 %v818_v2, %v782_v57  ;;  %v2167_v2 = vld [vmem:[#allocation5_spill] sm:$0xff] }
 0x14a   : > { %1536 = vpow2.f32 %v1291_v0  ;;  %v1292_v56 = vmul.f32 -1.442695, %v819_v48 }
 0x14c   : > { %1538 = vpow2.f32 %v1292_v56 }
 0x154   : > { %v1537_v33 = vpop.eup %1536 }
 0x155   : > { %v787_v8 = vadd.f32 1.0, %v1537_v33  ;;  %v2168_v33 = vld [vmem:[#allocation10_spill] sm:$0xff] }
 0x156   : > { %v1539_v3 = vpop.eup %1538 }
 0x157   : > { %1540 = vrcp.f32 %v787_v8  ;;  %v823_v38 = vadd.f32 1.0, %v1539_v3  ;;  %v2169_v3 = vld [vmem:[#allocation8_spill] sm:$0xff] }
 0x159   : > { %1542 = vrcp.f32 %v823_v38 }
 0x161   : > { %v1891_v54 = vpop.eup %1540 }
 0x162   : > { %v831_v47 = vmul.f32 %v1891_v54, %v1630_v5  ;;  %v830_v62 = vmul.f32 %v1891_v54, %v1627_v4  ;;  %v832_v22 = vmul.f32 %v1891_v54, %v1641_v9  ;;  %v833_v42 = vmul.f32 %v1891_v54, %v1644_v10 }
 0x163   : > { %v1897_v37 = vpop.eup %1542  ;;  %v836_v1 = vmul.f32 %v1891_v54, %v1679_v25  ;;  %v837_v50 = vmul.f32 %v1891_v54, %v1682_v27  ;;  %v843_v40 = vmul.f32 %v1891_v54, %v2166_v31  ;;  %v844_v8 = vmul.f32 %v1891_v54, %v2168_v33 }
 0x164   : > { %v849_v41 = vsel %vm760_vm0, %v831_v47, 0.0  ;;  %v846_v18 = vsel %vm760_vm0, %v830_v62, 0.0  ;;  %v894_v23 = vmul.f32 %v1897_v37, %v1633_v6  ;;  %v852_v5 = vsel %vm760_vm0, %v832_v22, 0.0  ;;  %v2171_v22 = vld [vmem:[#allocation9_spill] sm:$0xff] }
 0x165   : > { %850 = vadd.xlane.f32.xlu1 %v849_v41  ;;  %847 = vadd.xlane.f32.xlu0 %v846_v18  ;;  %v895_v59 = vmul.f32 %v1897_v37, %v1636_v7  ;;  %v855_v9 = vsel %vm760_vm0, %v833_v42, 0.0  ;;  %v834_v6 = vmul.f32 %v1891_v54, %v1657_v15  ;;  %v896_v32 = vmul.f32 %v1897_v37, %v1651_v13  ;;  %v2170_v41 = vld [vmem:[#allocation11_spill] sm:$0xff]  ;;  %v2172_v42 = vld [vmem:[#allocation12_spill] sm:$0xff] }
 0x166   : > { %v910_v4 = vsel %vm760_vm0, %v894_v23, 0.0  ;;  %v835_v15 = vmul.f32 %v1891_v54, %v1666_v19  ;;  %v897_v13 = vmul.f32 %v1897_v37, %v1654_v14  ;;  %v827_v63 = vsel %vm826_vm1, %v1891_v54, %v1897_v37 }
 0x167   : > { %v913_v24 = vsel %vm760_vm0, %v895_v59, 0.0  ;;  %v858_v7 = vsel %vm760_vm0, %v834_v6, 0.0  ;;  %v916_v10 = vsel %vm760_vm0, %v896_v32, 0.0  ;;  %829 = vst.msk [vmem:[%s308_s13] sm:$0x3] %vm828_vm2, %v827_v63  ;;  %v898_v19 = vmul.f32 %v1897_v37, %v1669_v20 }
 0x168   : > { %v861_v49 = vsel %vm760_vm0, %v835_v15, 0.0  ;;  %v919_v43 = vsel %vm760_vm0, %v897_v13, 0.0  ;;  %v864_v14 = vsel %vm760_vm0, %v836_v1, 0.0  ;;  %v899_v61 = vmul.f32 %v1897_v37, %v1672_v21 }
 0x169   : > { %853 = vadd.xlane.f32.xlu1 %v852_v5  ;;  %911 = vadd.xlane.f32.xlu0 %v910_v4  ;;  %v922_v11 = vsel %vm760_vm0, %v898_v19, 0.0  ;;  %v867_v52 = vsel %vm760_vm0, %v837_v50, 0.0  ;;  %v838_v20 = vmul.f32 %v1891_v54, %v1697_v34  ;;  %v900_v26 = vmul.f32 %v1897_v37, %v1685_v28 }
 0x16a   : > { %v925_v25 = vsel %vm760_vm0, %v899_v61, 0.0  ;;  %v839_v21 = vmul.f32 %v1891_v54, %v1700_v35  ;;  %v901_v17 = vmul.f32 %v1897_v37, %v1688_v29  ;;  %v840_v28 = vmul.f32 %v1891_v54, %v1721_v44 }
 0x16b   : > { %v870_v51 = vsel %vm760_vm0, %v838_v20, 0.0  ;;  %v928_v27 = vsel %vm760_vm0, %v900_v26, 0.0  ;;  %v902_v30 = vmul.f32 %v1897_v37, %v1703_v36  ;;  %v841_v29 = vmul.f32 %v1891_v54, %v1727_v46 }
 0x16c   : > { %v873_v55 = vsel %vm760_vm0, %v839_v21, 0.0  ;;  %v931_v34 = vsel %vm760_vm0, %v901_v17, 0.0  ;;  %v876_v12 = vsel %vm760_vm0, %v840_v28, 0.0  ;;  %v903_v53 = vmul.f32 %v1897_v37, %v2163_v16 }
 0x16d   : > { %856 = vadd.xlane.f32.xlu1 %v855_v9  ;;  %914 = vadd.xlane.f32.xlu0 %v913_v24  ;;  %v934_v35 = vsel %vm760_vm0, %v902_v30, 0.0  ;;  %v879_v45 = vsel %vm760_vm0, %v841_v29, 0.0  ;;  %v842_v36 = vmul.f32 %v1891_v54, %v2164_v39  ;;  %v904_v57 = vmul.f32 %v1897_v37, %v2165_v60  ;;  %v2173_v24 = vld [vmem:[#allocation13_spill] sm:$0xff] }
 0x16e   : > { %v937_v44 = vsel %vm760_vm0, %v903_v53, 0.0  ;;  %v905_v0 = vmul.f32 %v1897_v37, %v2167_v2  ;;  %v885_v48 = vsel %vm760_vm0, %v843_v40, 0.0  ;;  %v906_v38 = vmul.f32 %v1897_v37, %v2169_v3 }
 0x16f   : > { %v882_v58 = vsel %vm760_vm0, %v842_v36, 0.0  ;;  %v940_v46 = vsel %vm760_vm0, %v904_v57, 0.0  ;;  %v888_v47 = vsel %vm760_vm0, %v844_v8, 0.0  ;;  %v845_v18 = vmul.f32 %v1891_v54, %v2170_v41 }
 0x170   : > { %v943_v56 = vsel %vm760_vm0, %v905_v0, 0.0  ;;  %v946_v62 = vsel %vm760_vm0, %v906_v38, 0.0  ;;  %v907_v23 = vmul.f32 %v1897_v37, %v2171_v22  ;;  %v908_v59 = vmul.f32 %v1897_v37, %v2172_v42 }
 0x171   : > { %859 = vadd.xlane.f32.xlu1 %v858_v7  ;;  %917 = vadd.xlane.f32.xlu0 %v916_v10  ;;  %v891_v5 = vsel %vm760_vm0, %v845_v18, 0.0  ;;  %v909_v6 = vmul.f32 %v1897_v37, %v2173_v24  ;;  %vm1083_vm2 = vcmask 1048512  }
 0x172   : > { %v949_v4 = vsel %vm760_vm0, %v907_v23, 0.0  ;;  %v952_v9 = vsel %vm760_vm0, %v908_v59, 0.0 }
 0x173   : > { %v955_v54 = vsel %vm760_vm0, %v909_v6, 0.0  ;;  %vm1076_vm0 = vcmask 982912  }
 0x175   : > { %862 = vadd.xlane.f32.xlu1 %v861_v49  ;;  %920 = vadd.xlane.f32.xlu0 %v919_v43 }
 0x179   : > { %865 = vadd.xlane.f32.xlu1 %v864_v14  ;;  %923 = vadd.xlane.f32.xlu0 %v922_v11 }
 0x17d   : > { %868 = vadd.xlane.f32.xlu1 %v867_v52  ;;  %926 = vadd.xlane.f32.xlu0 %v925_v25  ;;  %v974_v25 = vlaneseq }
 0x17f   : > { %v977_v17 = vshrl.u32 %v974_v25, 7 }
 0x181   : > { %871 = vadd.xlane.f32.xlu1 %v870_v51  ;;  %929 = vadd.xlane.f32.xlu0 %v928_v27  ;;  %v975_v51 = vand.u32 127, %v974_v25 }
 0x183   : > { %v978_v16 = vsub.s32 %v975_v51, %v977_v17  ;;  %v1008_v53 = vadd.s32 4294967256, %v975_v51  ;;  %v1029_v36 = vadd.s32 4294967232, %v975_v51  ;;  %v1036_v60 = vadd.s32 4294967224, %v975_v51 }
 0x184   : > { %v1043_v40 = vadd.s32 4294967216, %v975_v51  ;;  %v1050_v0 = vadd.s32 4294967208, %v975_v51  ;;  %v1064_v8 = vadd.s32 4294967192, %v975_v51  ;;  %v1071_v41 = vadd.s32 4294967184, %v975_v51 }
 0x185   : > { %874 = vadd.xlane.f32.xlu1 %v873_v55  ;;  %932 = vadd.xlane.f32.xlu0 %v931_v34  ;;  %v980_v55 = vadd.s32 4294967288, %v975_v51  ;;  %v987_v34 = vadd.s32 4294967280, %v975_v51  ;;  %v1011_v2 = vsub.s32 %v1008_v53, %v977_v17  ;;  %v1032_v3 = vsub.s32 %v1029_v36, %v977_v17 }
 0x186   : > { %v2048_v38 = vsub.s32 %v1036_v60, %v977_v17  ;;  %v1078_v18 = vadd.s32 4294967176, %v975_v51 }
 0x187   : > { %v983_v29 = vsub.s32 %v980_v55, %v977_v17  ;;  %v990_v39 = vsub.s32 %v987_v34, %v977_v17 }
 0x189   : > { %877 = vadd.xlane.f32.xlu1 %v876_v12  ;;  %935 = vadd.xlane.f32.xlu0 %v934_v35  ;;  %v994_v12 = vadd.s32 4294967272, %v975_v51  ;;  %v1001_v35 = vadd.s32 4294967264, %v975_v51 }
 0x18b   : > { %v1004_v31 = vsub.s32 %v1001_v35, %v977_v17 }
 0x18d   : > { %880 = vadd.xlane.f32.xlu1 %v879_v45  ;;  %938 = vadd.xlane.f32.xlu0 %v937_v44  ;;  %v1015_v45 = vadd.s32 4294967248, %v975_v51  ;;  %v1022_v44 = vadd.s32 4294967240, %v975_v51 }
 0x18f   : > { %v1025_v33 = vsub.s32 %v1022_v44, %v977_v17 }
 0x191   : > { %883 = vadd.xlane.f32.xlu1 %v882_v58  ;;  %941 = vadd.xlane.f32.xlu0 %v940_v46  ;;  %v997_v46 = vsub.s32 %v994_v12, %v977_v17 }
 0x195   : > { %886 = vadd.xlane.f32.xlu1 %v885_v48  ;;  %944 = vadd.xlane.f32.xlu0 %v943_v56  ;;  %v1057_v48 = vadd.s32 4294967200, %v975_v51  ;;  %v1018_v56 = vsub.s32 %v1015_v45, %v977_v17  ;;  %v2070_v51 = vsub.s32 %v1078_v18, %v977_v17 }
 0x197   : > { %v2059_v24 = vsub.s32 %v1057_v48, %v977_v17 }
 0x199   : > { %889 = vadd.xlane.f32.xlu1 %v888_v47  ;;  %947 = vadd.xlane.f32.xlu0 %v946_v62 }
 0x19d   : > { %892 = vadd.xlane.f32.xlu1 %v891_v5  ;;  %950 = vadd.xlane.f32.xlu0 %v949_v4  ;;  %v1046_v4 = vsub.s32 %v1043_v40, %v977_v17 }
 0x1a1   : > { %953 = vadd.xlane.f32.xlu0 %v952_v9  ;;  %v1053_v9 = vsub.s32 %v1050_v0, %v977_v17 }
 0x1a5   : > { %956 = vadd.xlane.f32.xlu0 %v955_v54 }
 0x1f2   : > { %v2000_v32 = vpop.xlane.xlu1 %850  ;;  %v2002_v7 = vpop.xlane.xlu0 %847 }
 0x1f3   : > { %v984_v22 = vrot.slane %v2000_v32, %v983_v29  ;;  %v979_v23 = vrot.slane %v2002_v7, %v978_v16  ;;  %v2064_v7 = vsub.s32 %v1064_v8, %v977_v17 }
 0x1f5   : > { %v986_v55 = vsel %vm985_vm3, %v984_v22, %v979_v23 }
 0x1f6   : > { %v2004_v10 = vpop.xlane.xlu1 %853  ;;  %v2006_v15 = vpop.xlane.xlu0 %911 }
 0x1f7   : > { %v991_v42 = vrot.slane %v2004_v10, %v990_v39  ;;  %v1105_v6 = vrot.slane %v2006_v15, %v978_v16  ;;  %v2068_v10 = vsub.s32 %v1071_v41, %v977_v17 }
 0x1f9   : > { %v993_v34 = vsel %vm992_vm4, %v991_v42, %v986_v55 }
 0x1fa   : > { %v2008_v13 = vpop.xlane.xlu1 %856  ;;  %v2010_v63 = vpop.xlane.xlu0 %914 }
 0x1fb   : > { %v1109_v5 = vrot.slane %v2010_v63, %v983_v29  ;;  %v998_v54 = vrot.slane %v2008_v13, %v997_v46 }
 0x1fd   : > { %v1110_v15 = vsel %vm985_vm3, %v1109_v5, %v1105_v6  ;;  %v1000_v35 = vsel %vm999_vm5, %v998_v54, %v993_v34 }
 0x1fe   : > { %v2012_v49 = vpop.xlane.xlu1 %859  ;;  %v2014_v43 = vpop.xlane.xlu0 %917 }
 0x1ff   : > { %v1114_v59 = vrot.slane %v2014_v43, %v990_v39  ;;  %v1005_v63 = vrot.slane %v2012_v49, %v1004_v31 }
 0x201   : > { %v1115_v49 = vsel %vm992_vm4, %v1114_v59, %v1110_v15 }
 0x202   : > { %v2016_v37 = vpop.xlane.xlu1 %862  ;;  %v2018_v1 = vpop.xlane.xlu0 %920 }
 0x203   : > { %v1119_v32 = vrot.slane %v2018_v1, %v997_v46  ;;  %v1012_v13 = vrot.slane %v2016_v37, %v1011_v2 }
 0x205   : > { %v1120_v29 = vsel %vm999_vm5, %v1119_v32, %v1115_v49 }
 0x206   : > { %v2020_v19 = vpop.xlane.xlu1 %865  ;;  %v2022_v14 = vpop.xlane.xlu0 %923 }
 0x207   : > { %v1124_v25 = vrot.slane %v2022_v14, %v1004_v31  ;;  %v1019_v14 = vrot.slane %v2020_v19, %v1018_v56 }
 0x209   : > { %v1125_v53 = vsel %vm1006_vm6, %v1124_v25, %v1120_v29 }
 0x20a   : > { %v2024_v11 = vpop.xlane.xlu1 %868  ;;  %v2026_v50 = vpop.xlane.xlu0 %926 }
 0x20b   : > { %v1129_v1 = vrot.slane %v2026_v50, %v1011_v2  ;;  %v1026_v16 = vrot.slane %v2024_v11, %v1025_v33  ;;  %v1007_v50 = vsel %vm1006_vm6, %v1005_v63, %v1000_v35 }
 0x20d   : > { %v1130_v39 = vsel %vm1013_vm7, %v1129_v1, %v1125_v53 }
 0x20e   : > { %v2028_v61 = vpop.xlane.xlu1 %871  ;;  %v2030_v52 = vpop.xlane.xlu0 %929 }
 0x20f   : > { %v1134_v12 = vrot.slane %v2030_v52, %v1018_v56  ;;  %v1033_v45 = vrot.slane %v2028_v61, %v1032_v3  ;;  %v1014_v52 = vsel %vm1013_vm7, %v1012_v13, %v1007_v50 }
 0x211   : > { %v1135_v60 = vsel %vm1020_vm8, %v1134_v12, %v1130_v39 }
 0x212   : > { %v2032_v20 = vpop.xlane.xlu1 %874  ;;  %v2034_v26 = vpop.xlane.xlu0 %932 }
 0x213   : > { %v1139_v37 = vrot.slane %v2034_v26, %v1025_v33  ;;  %v1040_v36 = vrot.slane %v2032_v20, %v2048_v38  ;;  %v1021_v26 = vsel %vm1020_vm8, %v1019_v14, %v1014_v52 }
 0x215   : > { %v1140_v31 = vsel %vm1027_vm9, %v1139_v37, %v1135_v60 }
 0x216   : > { %v2036_v27 = vpop.xlane.xlu1 %877  ;;  %v2038_v21 = vpop.xlane.xlu0 %935 }
 0x217   : > { %v1144_v19 = vrot.slane %v2038_v21, %v1032_v3  ;;  %v1047_v46 = vrot.slane %v2036_v27, %v1046_v4  ;;  %v1028_v21 = vsel %vm1027_vm9, %v1026_v16, %v1021_v26 }
 0x218   : > { %v1035_v20 = vsel %vm1034_vm10, %v1033_v45, %v1028_v21 }
 0x21a   : > { %v2040_v28 = vpop.xlane.xlu1 %880  ;;  %v2042_v30 = vpop.xlane.xlu0 %938 }
 0x21b   : > { %v1149_v11 = vrot.slane %v2042_v30, %v2048_v38  ;;  %v1054_v40 = vrot.slane %v2040_v28, %v1053_v9  ;;  %v1145_v30 = vsel %vm1034_vm10, %v1144_v19, %v1140_v31 }
 0x21d   : > { %v1150_v33 = vsel %vm1041_vm11, %v1149_v11, %v1145_v30 }
 0x21e   : > { %v2044_v57 = vpop.xlane.xlu1 %883  ;;  %v2046_v58 = vpop.xlane.xlu0 %941 }
 0x21f   : > { %v1154_v61 = vrot.slane %v2046_v58, %v1046_v4  ;;  %v1061_v0 = vrot.slane %v2044_v57, %v2059_v24  ;;  %v1042_v58 = vsel %vm1041_vm11, %v1040_v36, %v1035_v20 }
 0x220   : > { %v1049_v3 = vsel %vm1048_vm12, %v1047_v46, %v1042_v58 }
 0x221   : > { %v1155_v38 = vsel %vm1048_vm12, %v1154_v61, %v1150_v33  ;;  %v1056_v41 = vsel %vm1055_vm13, %v1054_v40, %v1049_v3 }
 0x222   : > { %v2050_v47 = vpop.xlane.xlu1 %886  ;;  %v2052_v62 = vpop.xlane.xlu0 %944 }
 0x223   : > { %v1159_v2 = vrot.slane %v2052_v62, %v1053_v9  ;;  %v1068_v28 = vrot.slane %v2050_v47, %v2064_v7  ;;  %v1063_v47 = vsel %vm1062_vm14, %v1061_v0, %v1056_v41 }
 0x225   : > { %v1160_v18 = vsel %vm1055_vm13, %v1159_v2, %v1155_v38  ;;  %v1070_v4 = vsel %vm1069_vm15, %v1068_v28, %v1063_v47 }
 0x226   : > { %v948_v43 = vpop.xlane.xlu0 %947  ;;  %v890_v17 = vpop.xlane.xlu1 %889 }
 0x227   : > { %v1164_v48 = vrot.slane %v948_v43, %v2059_v24  ;;  %v1075_v57 = vrot.slane %v890_v17, %v2068_v10 }
 0x229   : > { %v1165_v23 = vsel %vm1062_vm14, %v1164_v48, %v1160_v18  ;;  %v1077_v9 = vsel %vm1076_vm0, %v1075_v57, %v1070_v4 }
 0x22a   : > { %v951_v44 = vpop.xlane.xlu0 %950  ;;  %v893_v27 = vpop.xlane.xlu1 %892 }
 0x22b   : > { %v1169_v8 = vrot.slane %v951_v44, %v2064_v7  ;;  %v1082_v22 = vrot.slane %v893_v27, %v2070_v51 }
 0x22d   : > { %v1170_v42 = vsel %vm1069_vm15, %v1169_v8, %v1165_v23  ;;  %v1084_v6 = vsel %vm1083_vm2, %v1082_v22, %v1077_v9 }
 0x22e   : > { %v954_v56 = vpop.xlane.xlu0 %953 }
 0x22f   : > { %v1174_v62 = vrot.slane %v954_v56, %v2068_v10 }
 0x231   : > { %v1175_v24 = vsel %vm1076_vm0, %v1174_v62, %v1170_v42 }
 0x232   : > { %v957_v5 = vpop.xlane.xlu0 %956 }
 0x233   : > { %v1179_v59 = vrot.slane %v957_v5, %v2070_v51 }
 0x235   : > { %v1180_v54 = vsel %vm1083_vm2, %v1179_v59, %v1175_v24 }
 0x236   : > { %v1182_v32 = vsel %vm826_vm1, %v1084_v6, %v1180_v54 }
 0x237   : > { %1183 = vst [vmem:[%s304_s16] sm:$0x3] %v1182_v32 }
 0x238 PF: > { %s19_s26 = sadd.s32 1, %s1550_s26  }
 0x239   : > { %p16_p4 = scmp.ge.s32.totalorder %s19_s26, 4  }
 0x23b   :  { %18 = sbr.rel (!%p16_p4) target bundleno = 2 (0x2), region = 89 }

</bundles_post_ra>
